<compile_context>
chip_gen: v6e
topology: v6e:2x2x1
jax: 0.10.0
libtpu: 0.0.40
codegen_flags: <defaults>
</compile_context>

<pallas_src>
import functools

import jax
import jax.numpy as jnp
from jax.experimental import pallas as pl
from jax.experimental.pallas import tpu as pltpu

EPS = 1e-10


def _ngf_kernel(hpos_ref, wpos_ref, i0_ref, i1_ref, out_ref, *, w_size, h_size):
    # hpos_ref / wpos_ref: (1, W*H) int32 per-lane h / w positions (resident).
    # i0_ref / i1_ref:     (T, W*H) slabs of folded planes (native dtype).
    # out_ref:             (1, 1, 1) f32 per-block partial sum.
    x0 = i0_ref[...].astype(jnp.float32)
    x1 = i1_ref[...].astype(jnp.float32)
    hpos = hpos_ref[...]
    wpos = wpos_ref[...]

    wh = x0.shape[-1]
    sh_up = (wh - h_size) % wh    # y[l] = x[l + H]  -> x[w+1, h]
    sh_dn = h_size % wh           # y[l] = x[l - H]  -> x[w-1, h]
    sh_rt = (wh - 1) % wh         # y[l] = x[l + 1]  -> x[w, h+1]
    sh_lt = 1 % wh                # y[l] = x[l - 1]  -> x[w, h-1]

    w_first = wpos == 0
    w_last = wpos == (w_size - 1)
    h_first = hpos == 0
    h_last = hpos == (h_size - 1)

    def grads(x):
        up = pltpu.roll(x, shift=sh_up, axis=1)
        dn = pltpu.roll(x, shift=sh_dn, axis=1)
        rt = pltpu.roll(x, shift=sh_rt, axis=1)
        lt = pltpu.roll(x, shift=sh_lt, axis=1)
        # Edge-clamped central differences == PyTorch's one-sided borders.
        gx = jnp.where(w_last, x, up) - jnp.where(w_first, x, dn)
        gy = jnp.where(h_last, x, rt) - jnp.where(h_first, x, lt)
        return gx, gy

    gx0, gy0 = grads(x0)
    gx1, gy1 = grads(x1)

    q0 = gx0 * gx0 + gy0 * gy0 + EPS
    q1 = gx1 * gx1 + gy1 * gy1 + EPS
    num = gx0 * gx1 + gy0 * gy1
    # (gx0/n0)*(gx1/n1) + (gy0/n0)*(gy1/n1) == num * rsqrt(q0*q1)
    dot = num * jax.lax.rsqrt(q0 * q1)

    out_ref[...] = jnp.sum(dot * dot).reshape(1, 1, 1)


def _plan_row_blocking(n_rows, row_bytes, budget_bytes=2 << 20):
    """Pick rows-per-block T (sublane dim) and the zero-padded row count."""
    cap = max(1, budget_bytes // row_bytes)
    if cap >= n_rows:
        return n_rows, n_rows
    t = (cap // 8) * 8
    if t == 0:
        # A single folded plane exceeds the per-tile budget.
        # TODO(synk): tile along the folded W*H axis with a +-H lane halo for
        # very large planes instead of inflating the VMEM footprint.
        t = 8 if n_rows >= 8 else n_rows
    n_pad = -(-n_rows // t) * t
    return t, n_pad


def ngf_loss(I0, I1):
    """Pallas implementation of NGFLoss.forward(I0, I1) for (B, C, W, H)."""
    assert I0.shape == I1.shape, (I0.shape, I1.shape)
    B, C, W, H = I0.shape
    N = B * C
    WH = W * H

    # Free reshape: no HBM copy, native dtype (in-kernel cast halves DMA for bf16).
    x0 = I0.reshape(N, WH)
    x1 = I1.reshape(N, WH)
    itemsize = x0.dtype.itemsize

    T, n_pad = _plan_row_blocking(N, WH * itemsize)
    if n_pad != N:
        # Zero planes have zero gradients -> contribute exactly 0 to the sum.
        x0 = jnp.pad(x0, ((0, n_pad - N), (0, 0)))
        x1 = jnp.pad(x1, ((0, n_pad - N), (0, 0)))
    num_blocks = n_pad // T

    # Per-lane (h, w) positions inside each folded plane (tiny, VMEM-resident).
    lane = jnp.arange(WH, dtype=jnp.int32)
    hpos = (lane % H).reshape(1, WH)
    wpos = (lane // H).reshape(1, WH)

    kernel = functools.partial(_ngf_kernel, w_size=W, h_size=H)

    tile_bytes = T * WH * itemsize
    vmem_needed = 4 * tile_bytes + (2 << 20)   # 2 inputs x 2 pipeline buffers
    cp_kwargs = dict(dimension_semantics=("parallel",))
    if vmem_needed > (12 << 20):
        cp_kwargs["vmem_limit_bytes"] = int(vmem_needed + (4 << 20))

    n_pix = N * WH
    cost = pl.CostEstimate(
        flops=int(30 * n_pix),
        transcendentals=int(n_pix),
        bytes_accessed=int(2 * n_pad * WH * itemsize + 2 * WH * 4 + num_blocks * 4),
    )

    partials = pl.pallas_call(
        kernel,
        out_shape=jax.ShapeDtypeStruct((num_blocks, 1, 1), jnp.float32),
        grid=(num_blocks,),
        in_specs=[
            pl.BlockSpec((1, WH), lambda i: (0, 0)),   # hpos (resident)
            pl.BlockSpec((1, WH), lambda i: (0, 0)),   # wpos (resident)
            pl.BlockSpec((T, WH), lambda i: (i, 0)),   # I0 slab
            pl.BlockSpec((T, WH), lambda i: (i, 0)),   # I1 slab
        ],
        out_specs=pl.BlockSpec((1, 1, 1), lambda i: (i, 0, 0)),
        compiler_params=pltpu.CompilerParams(**cp_kwargs),
        cost_estimate=cost,
    )(hpos, wpos, x0, x1)

    return 1.0 - jnp.sum(partials) / jnp.float32(n_pix)


def ngf_loss_ref(I0, I1):
    """Pure-JAX reference matching the PyTorch forward exactly."""
    def norm_grad(x):
        gx = (jnp.concatenate([x[:, :, 1:, :], x[:, :, -1:, :]], axis=2)
              - jnp.concatenate([x[:, :, 0:1, :], x[:, :, :-1, :]], axis=2))
        gy = (jnp.concatenate([x[:, :, :, 1:], x[:, :, :, -1:]], axis=3)
              - jnp.concatenate([x[:, :, :, 0:1], x[:, :, :, :-1]], axis=3))
        n = jnp.sqrt(gx ** 2 + gy ** 2 + EPS)
        return gx / n, gy / n

    gx0, gy0 = norm_grad(I0.astype(jnp.float32))
    gx1, gy1 = norm_grad(I1.astype(jnp.float32))
    dot = gx0 * gx1 + gy0 * gy1
    return 1.0 - jnp.mean(dot ** 2)


if __name__ == "__main__":
    key = jax.random.PRNGKey(0)
    k0, k1 = jax.random.split(key)
    shape = (2, 4, 16, 16)  # B, C, W, H
    I0 = jax.random.normal(k0, shape, dtype=jnp.float32)
    I1 = jax.random.normal(k1, shape, dtype=jnp.float32)

    out = jax.block_until_ready(ngf_loss(I0, I1))
    ref = jax.block_until_ready(ngf_loss_ref(I0, I1))

    assert jnp.allclose(out, ref, rtol=1e-5, atol=1e-5), (out, ref)
    print("KERNEL_OK")
</pallas_src>

<mosaic_0001>
module attributes {stable_mosaic.version = 11 : i64} {
  func.func @_ngf_kernel(%arg0: i32, %arg1: memref<1x256xi32, #tpu.memory_space<vmem>>, %arg2: memref<1x256xi32, #tpu.memory_space<vmem>>, %arg3: memref<8x256xf32, #tpu.memory_space<vmem>>, %arg4: memref<8x256xf32, #tpu.memory_space<vmem>>, %arg5: memref<1x1x1xf32, #tpu.memory_space<vmem>>) attributes {dimension_semantics = [#tpu.dimension_semantics<parallel>], iteration_bounds = array<i64: 1>, scalar_prefetch = 0 : i64, scratch_operands = 0 : i64, tpu.core_type = #tpu.core_type<tc>, window_params = [{pipeline_mode = #tpu.pipeline_mode<synchronous>, transform_indices = @transform_0, window_bounds = array<i64: 1, 256>}, {pipeline_mode = #tpu.pipeline_mode<synchronous>, transform_indices = @transform_1, window_bounds = array<i64: 1, 256>}, {transform_indices = @transform_2, window_bounds = array<i64: 8, 256>}, {transform_indices = @transform_3, window_bounds = array<i64: 8, 256>}, {transform_indices = @transform_4, window_bounds = array<i64: 1, 1, 1>}]} {
    %c0 = arith.constant 0 : index
    %c0_0 = arith.constant 0 : index
    %0 = vector.load %arg3[%c0, %c0_0] : memref<8x256xf32, #tpu.memory_space<vmem>>, vector<8x256xf32>
    %c0_1 = arith.constant 0 : index
    %c0_2 = arith.constant 0 : index
    %1 = vector.load %arg4[%c0_1, %c0_2] : memref<8x256xf32, #tpu.memory_space<vmem>>, vector<8x256xf32>
    %c0_3 = arith.constant 0 : index
    %c0_4 = arith.constant 0 : index
    %2 = vector.load %arg1[%c0_3, %c0_4] : memref<1x256xi32, #tpu.memory_space<vmem>>, vector<1x256xi32>
    %c0_5 = arith.constant 0 : index
    %c0_6 = arith.constant 0 : index
    %3 = vector.load %arg2[%c0_5, %c0_6] : memref<1x256xi32, #tpu.memory_space<vmem>>, vector<1x256xi32>
    %c0_i32 = arith.constant 0 : i32
    %4 = vector.broadcast %c0_i32 : i32 to vector<1x256xi32>
    %5 = arith.cmpi eq, %3, %4 : vector<1x256xi32>
    %c15_i32 = arith.constant 15 : i32
    %6 = vector.broadcast %c15_i32 : i32 to vector<1x256xi32>
    %7 = arith.cmpi eq, %3, %6 : vector<1x256xi32>
    %c0_i32_7 = arith.constant 0 : i32
    %8 = vector.broadcast %c0_i32_7 : i32 to vector<1x256xi32>
    %9 = arith.cmpi eq, %2, %8 : vector<1x256xi32>
    %c15_i32_8 = arith.constant 15 : i32
    %10 = vector.broadcast %c15_i32_8 : i32 to vector<1x256xi32>
    %11 = arith.cmpi eq, %2, %10 : vector<1x256xi32>
    %c240_i32 = arith.constant 240 : i32
    %12 = tpu.dynamic_rotate %0 by %c240_i32 dim 1 : vector<8x256xf32>, i32 -> vector<8x256xf32>
    %c16_i32 = arith.constant 16 : i32
    %13 = tpu.dynamic_rotate %0 by %c16_i32 dim 1 : vector<8x256xf32>, i32 -> vector<8x256xf32>
    %c255_i32 = arith.constant 255 : i32
    %14 = tpu.dynamic_rotate %0 by %c255_i32 dim 1 : vector<8x256xf32>, i32 -> vector<8x256xf32>
    %c1_i32 = arith.constant 1 : i32
    %15 = tpu.dynamic_rotate %0 by %c1_i32 dim 1 : vector<8x256xf32>, i32 -> vector<8x256xf32>
    %16 = vector.shape_cast %7 : vector<1x256xi1> to vector<1x256xi1>
    %17 = vector.broadcast %16 : vector<1x256xi1> to vector<8x256xi1>
    %18 = arith.select %17, %0, %12 : vector<8x256xi1>, vector<8x256xf32>
    %19 = vector.shape_cast %5 : vector<1x256xi1> to vector<1x256xi1>
    %20 = vector.broadcast %19 : vector<1x256xi1> to vector<8x256xi1>
    %21 = arith.select %20, %0, %13 : vector<8x256xi1>, vector<8x256xf32>
    %22 = arith.subf %18, %21 : vector<8x256xf32>
    %23 = vector.shape_cast %11 : vector<1x256xi1> to vector<1x256xi1>
    %24 = vector.broadcast %23 : vector<1x256xi1> to vector<8x256xi1>
    %25 = arith.select %24, %0, %14 : vector<8x256xi1>, vector<8x256xf32>
    %26 = vector.shape_cast %9 : vector<1x256xi1> to vector<1x256xi1>
    %27 = vector.broadcast %26 : vector<1x256xi1> to vector<8x256xi1>
    %28 = arith.select %27, %0, %15 : vector<8x256xi1>, vector<8x256xf32>
    %29 = arith.subf %25, %28 : vector<8x256xf32>
    %c240_i32_9 = arith.constant 240 : i32
    %30 = tpu.dynamic_rotate %1 by %c240_i32_9 dim 1 : vector<8x256xf32>, i32 -> vector<8x256xf32>
    %c16_i32_10 = arith.constant 16 : i32
    %31 = tpu.dynamic_rotate %1 by %c16_i32_10 dim 1 : vector<8x256xf32>, i32 -> vector<8x256xf32>
    %c255_i32_11 = arith.constant 255 : i32
    %32 = tpu.dynamic_rotate %1 by %c255_i32_11 dim 1 : vector<8x256xf32>, i32 -> vector<8x256xf32>
    %c1_i32_12 = arith.constant 1 : i32
    %33 = tpu.dynamic_rotate %1 by %c1_i32_12 dim 1 : vector<8x256xf32>, i32 -> vector<8x256xf32>
    %34 = vector.shape_cast %7 : vector<1x256xi1> to vector<1x256xi1>
    %35 = vector.broadcast %34 : vector<1x256xi1> to vector<8x256xi1>
    %36 = arith.select %35, %1, %30 : vector<8x256xi1>, vector<8x256xf32>
    %37 = vector.shape_cast %5 : vector<1x256xi1> to vector<1x256xi1>
    %38 = vector.broadcast %37 : vector<1x256xi1> to vector<8x256xi1>
    %39 = arith.select %38, %1, %31 : vector<8x256xi1>, vector<8x256xf32>
    %40 = arith.subf %36, %39 : vector<8x256xf32>
    %41 = vector.shape_cast %11 : vector<1x256xi1> to vector<1x256xi1>
    %42 = vector.broadcast %41 : vector<1x256xi1> to vector<8x256xi1>
    %43 = arith.select %42, %1, %32 : vector<8x256xi1>, vector<8x256xf32>
    %44 = vector.shape_cast %9 : vector<1x256xi1> to vector<1x256xi1>
    %45 = vector.broadcast %44 : vector<1x256xi1> to vector<8x256xi1>
    %46 = arith.select %45, %1, %33 : vector<8x256xi1>, vector<8x256xf32>
    %47 = arith.subf %43, %46 : vector<8x256xf32>
    %48 = arith.mulf %22, %22 : vector<8x256xf32>
    %49 = arith.mulf %29, %29 : vector<8x256xf32>
    %50 = arith.addf %48, %49 : vector<8x256xf32>
    %cst = arith.constant 1.000000e-10 : f32
    %51 = vector.broadcast %cst : f32 to vector<8x256xf32>
    %52 = arith.addf %50, %51 : vector<8x256xf32>
    %53 = arith.mulf %40, %40 : vector<8x256xf32>
    %54 = arith.mulf %47, %47 : vector<8x256xf32>
    %55 = arith.addf %53, %54 : vector<8x256xf32>
    %cst_13 = arith.constant 1.000000e-10 : f32
    %56 = vector.broadcast %cst_13 : f32 to vector<8x256xf32>
    %57 = arith.addf %55, %56 : vector<8x256xf32>
    %58 = arith.mulf %22, %40 : vector<8x256xf32>
    %59 = arith.mulf %29, %47 : vector<8x256xf32>
    %60 = arith.addf %58, %59 : vector<8x256xf32>
    %61 = arith.mulf %52, %57 : vector<8x256xf32>
    %62 = math.rsqrt %61 : vector<8x256xf32>
    %63 = arith.mulf %60, %62 : vector<8x256xf32>
    %64 = arith.mulf %63, %63 : vector<8x256xf32>
    %65 = vector.shape_cast %64 : vector<8x256xf32> to vector<1x8x256xf32>
    %cst_14 = arith.constant dense<0.000000e+00> : vector<1xf32>
    %66 = vector.multi_reduction <add>, %65, %cst_14 [1, 2] : vector<1x8x256xf32> to vector<1xf32>
    %67 = vector.shape_cast %66 : vector<1xf32> to vector<1x1x1xf32>
    %68 = vector.extract %67[0, 0, 0] : f32 from vector<1x1x1xf32>
    %69 = vector.broadcast %68 : f32 to vector<1x1x1xf32>
    %c0_15 = arith.constant 0 : index
    %c0_16 = arith.constant 0 : index
    %c0_17 = arith.constant 0 : index
    %70 = vector.load %arg5[%c0_15, %c0_16, %c0_17] : memref<1x1x1xf32, #tpu.memory_space<vmem>>, vector<1x1x1xf32>
    tpu.vector_store %arg5[%c0_15, %c0_16, %c0_17], %69 {strides = array<i32>} : memref<1x1x1xf32, #tpu.memory_space<vmem>>, vector<1x1x1xf32>,
    return
  }
  func.func @transform_0(%arg0: i32) -> (i32, i32) {
    %c0_i32 = arith.constant 0 : i32
    %c0_i32_0 = arith.constant 0 : i32
    %c0_i32_1 = arith.constant 0 : i32
    return %c0_i32, %c0_i32_0 : i32, i32
  }
  func.func @transform_1(%arg0: i32) -> (i32, i32) {
    %c0_i32 = arith.constant 0 : i32
    %c0_i32_0 = arith.constant 0 : i32
    %c0_i32_1 = arith.constant 0 : i32
    return %c0_i32, %c0_i32_0 : i32, i32
  }
  func.func @transform_2(%arg0: i32) -> (i32, i32) {
    %c0_i32 = arith.constant 0 : i32
    %c0_i32_0 = arith.constant 0 : i32
    return %arg0, %c0_i32 : i32, i32
  }
  func.func @transform_3(%arg0: i32) -> (i32, i32) {
    %c0_i32 = arith.constant 0 : i32
    %c0_i32_0 = arith.constant 0 : i32
    return %arg0, %c0_i32 : i32, i32
  }
  func.func @transform_4(%arg0: i32) -> (i32, i32, i32) {
    %c0_i32 = arith.constant 0 : i32
    %c0_i32_0 = arith.constant 0 : i32
    %c0_i32_1 = arith.constant 0 : i32
    return %arg0, %c0_i32, %c0_i32_0 : i32, i32, i32
  }
}

</mosaic_0001>

<bundles_post_ra>
// kernel: tpu_custom_call.1
= control target key start
LH: loop header
LB: loop body
LE: loop exit
PB: predicated region body
PF: predicated region fallthrough
CT: control target
= control target key end

     0   :  { %9 = vsyncpa [#allocation3], 0  ;;  %s573_s0 = inlined_call_operand.hbm [shape: s32[1,256], index: 0, kind: input, shape index: {}]   ;;  %s574_s1 = inlined_call_operand.hbm [shape: s32[1,256], index: 1, kind: input, shape index: {}]   ;;  %s575_s2 = inlined_call_operand.hbm [shape: f32[8,256], index: 2, kind: input, shape index: {}]   ;;  %s576_s3 = inlined_call_operand.hbm [shape: f32[8,256], index: 3, kind: input, shape index: {}]   ;;  %s577_s4 = inlined_call_operand.hbm [shape: f32[1,1,1], index: 4, kind: output, shape index: {}]  }
   0x1   :  { %10 = vsyncpa [#allocation6], 0 }
   0x2   :  { %11 = vsyncpa [#allocation9], 0 }
   0x3   :  { %12 = vsyncpa [#allocation4], 0  ;;  %s381_s15 = smov [#allocation5]   ;;  %s382_s17 = smov [#allocation2]  }
   0x4   :  { %s29_s16 = sshll.u32 %s381_s15, 4  ;;  %s19_s18 = sshll.u32 %s382_s17, 4  ;;  %s30_s16 = int_to_ptr.vmem [resolvable:$true] %s29_s16  ;;  %s20_s18 = int_to_ptr.vmem [resolvable:$true] %s19_s18 }
   0x5   :  { %s281_s19 = scalar_lea.vmem %s30_s16, 32  ;;  %p286_p1 = scmp.lt.s32.totalorder %s30_s16, %s30_s16 }
   0x6   :  { %p282_p0 = scmp.ne.s32.totalorder %s30_s16, %s281_s19  ;;  %p287_p2 = scmp.lt.s32.totalorder %s281_s19, %s281_s19 }
   0x8   :  { %p288_p3 = por %p287_p2, %p286_p1 }
   0xa   :  { %p289_p4 = pnand %p288_p3, %p282_p0 }
   0xc   :  { %292 = shalt.err (!%p289_p4)
}
   0xd   :  { %32 = dma.hbm_to_vmem [thread:$0]  %s574_s1, 32, %s30_s16, [#allocation6]  }
   0xe   :  { %s301_s22 = scalar_lea.vmem %s20_s18, 32  ;;  %p306_p6 = scmp.lt.s32.totalorder %s20_s18, %s20_s18 }
   0xf   :  { %p302_p5 = scmp.ne.s32.totalorder %s20_s18, %s301_s22  ;;  %p307_p7 = scmp.lt.s32.totalorder %s301_s22, %s301_s22 }
  0x11   :  { %p308_p8 = por %p307_p7, %p306_p6 }
  0x13   :  { %p309_p9 = pnand %p308_p8, %p302_p5 }
  0x15   :  { %312 = shalt.err (!%p309_p9)
}
  0x16   :  { %22 = dma.hbm_to_vmem [thread:$0]  %s573_s0, 32, %s20_s18, [#allocation3]  }
  0x17   :  { %s383_s25 = smov [#allocation7]   ;;  %s384_s27 = smov [#allocation8]  }
  0x18   :  { %s39_s26 = sshll.u32 %s383_s25, 4  ;;  %s49_s28 = sshll.u32 %s384_s27, 4  ;;  %s40_s26 = int_to_ptr.vmem [resolvable:$true] %s39_s26  ;;  %s50_s28 = int_to_ptr.vmem [resolvable:$true] %s49_s28 }
  0x19   :  { %s321_s29 = scalar_lea.vmem %s40_s26, 256  ;;  %p326_p11 = scmp.lt.s32.totalorder %s40_s26, %s40_s26 }
  0x1a   :  { %p322_p10 = scmp.ne.s32.totalorder %s40_s26, %s321_s29  ;;  %p327_p12 = scmp.lt.s32.totalorder %s321_s29, %s321_s29 }
  0x1c   :  { %p328_p13 = por %p327_p12, %p326_p11 }
  0x1e   :  { %p329_p0 = pnand %p328_p13, %p322_p10 }
  0x20   :  { %332 = shalt.err (!%p329_p0)
}
  0x21   :  { %42 = dma.hbm_to_vmem [thread:$0]  %s575_s2, 256, %s40_s26, [#allocation6]  }
  0x22   :  { %s341_s5 = scalar_lea.vmem %s50_s28, 256  ;;  %p346_p2 = scmp.lt.s32.totalorder %s50_s28, %s50_s28 }
  0x23   :  { %p342_p1 = scmp.ne.s32.totalorder %s50_s28, %s341_s5  ;;  %p347_p3 = scmp.lt.s32.totalorder %s341_s5, %s341_s5 }
  0x25   :  { %p348_p4 = por %p347_p3, %p346_p2 }
  0x27   :  { %p349_p5 = pnand %p348_p4, %p342_p1 }
  0x29   :  { %352 = shalt.err (!%p349_p5)
}
  0x2a   :  { %52 = dma.hbm_to_vmem [thread:$0]  %s576_s3, 256, %s50_s28, [#allocation9]  }
  0x2b   :  { %373 = dma.done.wait [#allocation3], 32  }
  0x2c   :  { %374 = vsyncadd [#allocation3], 4294967264 }
  0x2d   :  { %375 = dma.done.wait [#allocation6], 288  }
  0x2e   :  { %376 = vsyncadd [#allocation6], 4294967008 }
  0x2f   :  { %377 = dma.done.wait [#allocation9], 256  }
  0x30   :  { %378 = vsyncadd [#allocation9], 4294967040  ;;  %v428_v0 = vld [vmem:[#allocation7] sm:$0xff]  ;;  %s385_s2 = smov 16   ;;  %s386_s7 = smov 112   ;;  %v432_v1 = vld [vmem:[#allocation7 + $0x8] sm:$0xff]  ;;  %v79_v4 = vlaneseq }
  0x31   :  { %84 = vrot.lane.b32.xlu1 %v428_v0, %s385_s2  ;;  %75 = vrot.lane.b32.xlu0 %v428_v0, %s386_s7  ;;  %s387_s3 = smov 127   ;;  %s388_s8 = smov 1   ;;  %v440_v2 = vld [vmem:[#allocation8 + $0x8] sm:$0xff]  ;;  %v442_v3 = vld [vmem:[#allocation8] sm:$0xff]  ;;  %v389_v14 = vmov 0  }
  0x32   :  { %v70_v7 = vld [vmem:[#allocation5] sm:$0x3]  ;;  %v107_v8 = vshrl.u32 %v79_v4, 7  ;;  %v69_v11 = vld [vmem:[#allocation2] sm:$0x3]  ;;  %v452_v19 = vand.u32 127, %v79_v4 }
  0x33   :  { %vm71_vm0 = vcmp.eq.s32.totalorder %v70_v7, 0  ;;  %vm72_vm1 = vcmp.eq.s32.totalorder %v70_v7, 15  ;;  %vm74_vm2 = vcmp.eq.s32.totalorder %v69_v11, 15  ;;  %vm73_vm3 = vcmp.eq.s32.totalorder %v69_v11, 0  ;;  %s390_s9 = smov [#allocation10]  }
  0x34   :  { %v108_v12 = vsub.s32 0, %v107_v8  ;;  %v112_v13 = vsub.s32 1, %v107_v8  ;;  %v118_v15 = vsel %vm71_vm0, 1, %v389_v14  ;;  %v105_v16 = vsel %vm72_vm1, 1, %v389_v14  ;;  %s246_s10 = sshll.u32 %s390_s9, 4  ;;  %s247_s10 = int_to_ptr.vmem [resolvable:$true] %s246_s10 }
  0x35   :  { %86 = vrot.lane.b32.xlu1 %v432_v1, %s385_s2  ;;  %77 = vrot.lane.b32.xlu0 %v432_v1, %s386_s7  ;;  %v133_v20 = vsel %vm74_vm2, 1, %v389_v14  ;;  %v146_v21 = vsel %vm73_vm3, 1, %v389_v14  ;;  %vm88_vm4 = vcmp.lt.s32.totalorder %v452_v19, 16  ;;  %vm81_vm5 = vcmp.lt.s32.totalorder %v452_v19, 112  ;;  %s353_s12 = scalar_lea.vmem %s247_s10, 16  ;;  %s357_s13 = scalar_lea.vmem %s247_s10, 32 }
  0x36   :  { %v122_v22 = vrot.slane %v118_v15, %v108_v12  ;;  %v126_v23 = vrot.slane %v118_v15, %v112_v13  ;;  %v109_v24 = vrot.slane %v105_v16, %v108_v12  ;;  %v113_v25 = vrot.slane %v105_v16, %v112_v13  ;;  %p354_p6 = scmp.ne.s32.totalorder %s247_s10, %s353_s12  ;;  %p358_p7 = scmp.lt.s32.totalorder %s247_s10, %s247_s10 }
  0x37   :  { %vm102_vm6 = vcmp.lt.s32.totalorder %v452_v19, 1  ;;  %v137_v28 = vrot.slane %v133_v20, %v108_v12  ;;  %v141_v29 = vrot.slane %v133_v20, %v112_v13  ;;  %v150_v30 = vrot.slane %v146_v21, %v108_v12  ;;  %p359_p8 = scmp.lt.s32.totalorder %s357_s13, %s353_s12 }
  0x38   :  { %v154_v31 = vrot.slane %v146_v21, %v112_v13  ;;  %vm457_vm7 = vcmp.eq.s32.totalorder %v122_v22, 1  ;;  %vm461_vm8 = vcmp.eq.s32.totalorder %v126_v23, 1  ;;  %vm465_vm9 = vcmp.eq.s32.totalorder %v109_v24, 1 }
  0x39   :  { %93 = vrot.lane.b32.xlu1 %v432_v1, %s387_s3  ;;  %91 = vrot.lane.b32.xlu0 %v428_v0, %s387_s3  ;;  %vm469_vm10 = vcmp.eq.s32.totalorder %v113_v25, 1  ;;  %vm95_vm11 = vcmp.lt.s32.totalorder %v452_v19, 127  ;;  %vm482_vm12 = vcmp.eq.s32.totalorder %v150_v30, 1  ;;  %vm506_vm14 = vcmp.eq.s32.totalorder %v137_v28, 1  ;;  %p360_p9 = por %p359_p8, %p358_p7 }
  0x3a   :  { %vm486_vm13 = vcmp.eq.s32.totalorder %v154_v31, 1  ;;  %vm510_vm15 = vcmp.eq.s32.totalorder %v141_v29, 1  ;;  %vm238_vm0 = vcmask 0  }
  0x3b   :  { %p361_p10 = pnand %p360_p9, %p354_p6 }
  0x3d   :  { %100 = vrot.lane.b32.xlu1 %v432_v1, %s388_s8  ;;  %98 = vrot.lane.b32.xlu0 %v428_v0, %s388_s8 }
  0x41   :  { %163 = vrot.lane.b32.xlu1 %v440_v2, %s386_s7  ;;  %161 = vrot.lane.b32.xlu0 %v442_v3, %s386_s7 }
  0x45   :  { %169 = vrot.lane.b32.xlu1 %v440_v2, %s385_s2  ;;  %167 = vrot.lane.b32.xlu0 %v442_v3, %s385_s2 }
  0x49   :  { %175 = vrot.lane.b32.xlu1 %v440_v2, %s387_s3  ;;  %173 = vrot.lane.b32.xlu0 %v442_v3, %s387_s3 }
  0x4d   :  { %181 = vrot.lane.b32.xlu1 %v440_v2, %s388_s8  ;;  %179 = vrot.lane.b32.xlu0 %v442_v3, %s388_s8 }
  0xa3   :  { %v85_v5 = vpop.permute.xlu1 %84  ;;  %v76_v6 = vpop.permute.xlu0 %75 }
  0xa7   :  { %v87_v9 = vpop.permute.xlu1 %86  ;;  %v78_v10 = vpop.permute.xlu0 %77 }
  0xa8   :  { %v89_v36 = vsel %vm88_vm4, %v85_v5, %v87_v9  ;;  %v90_v37 = vsel %vm88_vm4, %v87_v9, %v85_v5  ;;  %v82_v38 = vsel %vm81_vm5, %v76_v6, %v78_v10  ;;  %v83_v39 = vsel %vm81_vm5, %v78_v10, %v76_v6 }
  0xa9   :  { %v129_v46 = vsel %vm457_vm7, %v428_v0, %v90_v37  ;;  %v130_v47 = vsel %vm461_vm8, %v432_v1, %v89_v36  ;;  %v116_v48 = vsel %vm465_vm9, %v428_v0, %v82_v38  ;;  %v117_v49 = vsel %vm469_vm10, %v432_v1, %v83_v39 }
  0xaa   :  { %v131_v58 = vsub.f32 %v116_v48, %v129_v46  ;;  %v132_v59 = vsub.f32 %v117_v49, %v130_v47 }
  0xab   :  { %v94_v17 = vpop.permute.xlu1 %93  ;;  %v92_v18 = vpop.permute.xlu0 %91 }
  0xac   :  { %v96_v52 = vsel %vm95_vm11, %v92_v18, %v94_v17  ;;  %v97_v53 = vsel %vm95_vm11, %v94_v17, %v92_v18  ;;  %v197_v10 = vmul.f32 %v131_v58, %v131_v58  ;;  %v198_v11 = vmul.f32 %v132_v59, %v132_v59 }
  0xad   :  { %v144_v60 = vsel %vm506_vm14, %v428_v0, %v96_v52  ;;  %v145_v61 = vsel %vm510_vm15, %v432_v1, %v97_v53 }
  0xaf   :  { %v101_v26 = vpop.permute.xlu1 %100  ;;  %v99_v27 = vpop.permute.xlu0 %98 }
  0xb0   :  { %v103_v44 = vsel %vm102_vm6, %v99_v27, %v101_v26  ;;  %v104_v45 = vsel %vm102_vm6, %v101_v26, %v99_v27 }
  0xb1   :  { %v157_v56 = vsel %vm482_vm12, %v428_v0, %v104_v45  ;;  %v158_v57 = vsel %vm486_vm13, %v432_v1, %v103_v44 }
  0xb2   :  { %v159_v4 = vsub.f32 %v144_v60, %v157_v56  ;;  %v160_v5 = vsub.f32 %v145_v61, %v158_v57 }
  0xb3   :  { %v164_v40 = vpop.permute.xlu1 %163  ;;  %v162_v41 = vpop.permute.xlu0 %161 }
  0xb4   :  { %v165_v8 = vsel %vm81_vm5, %v162_v41, %v164_v40  ;;  %v166_v0 = vsel %vm81_vm5, %v164_v40, %v162_v41  ;;  %v199_v14 = vmul.f32 %v159_v4, %v159_v4  ;;  %v200_v15 = vmul.f32 %v160_v5, %v160_v5 }
  0xb5   :  { %v185_v16 = vsel %vm465_vm9, %v442_v3, %v165_v8  ;;  %v186_v17 = vsel %vm469_vm10, %v440_v2, %v166_v0 }
  0xb6   :  { %v201_v19 = vadd.f32 %v199_v14, %v197_v10  ;;  %v202_v31 = vadd.f32 %v200_v15, %v198_v11 }
  0xb7   :  { %v170_v54 = vpop.permute.xlu1 %169  ;;  %v168_v55 = vpop.permute.xlu0 %167 }
  0xb8   :  { %v171_v62 = vsel %vm88_vm4, %v168_v55, %v170_v54  ;;  %v172_v63 = vsel %vm88_vm4, %v170_v54, %v168_v55  ;;  %v203_v38 = vadd.f32 1e-10, %v201_v19  ;;  %v204_v39 = vadd.f32 1e-10, %v202_v31 }
  0xb9   :  { %v187_v1 = vsel %vm457_vm7, %v442_v3, %v172_v63  ;;  %v188_v9 = vsel %vm461_vm8, %v440_v2, %v171_v62 }
  0xba   :  { %v189_v21 = vsub.f32 %v185_v16, %v187_v1  ;;  %v190_v22 = vsub.f32 %v186_v17, %v188_v9 }
  0xbb   :  { %v176_v6 = vpop.permute.xlu1 %175  ;;  %v174_v7 = vpop.permute.xlu0 %173 }
  0xbc   :  { %v177_v12 = vsel %vm95_vm11, %v174_v7, %v176_v6  ;;  %v178_v13 = vsel %vm95_vm11, %v176_v6, %v174_v7  ;;  %v205_v32 = vmul.f32 %v189_v21, %v189_v21  ;;  %v206_v33 = vmul.f32 %v190_v22, %v190_v22 }
  0xbd   :  { %v191_v25 = vsel %vm506_vm14, %v442_v3, %v177_v12  ;;  %v192_v26 = vsel %vm510_vm15, %v440_v2, %v178_v13  ;;  %v213_v44 = vmul.f32 %v189_v21, %v131_v58  ;;  %v214_v45 = vmul.f32 %v190_v22, %v132_v59 }
  0xbf   :  { %v182_v18 = vpop.permute.xlu1 %181  ;;  %v180_v20 = vpop.permute.xlu0 %179 }
  0xc0   :  { %v183_v23 = vsel %vm102_vm6, %v180_v20, %v182_v18  ;;  %v184_v24 = vsel %vm102_vm6, %v182_v18, %v180_v20 }
  0xc1   :  { %v193_v27 = vsel %vm482_vm12, %v442_v3, %v184_v24  ;;  %v194_v28 = vsel %vm486_vm13, %v440_v2, %v183_v23 }
  0xc2   :  { %v195_v29 = vsub.f32 %v191_v25, %v193_v27  ;;  %v196_v30 = vsub.f32 %v192_v26, %v194_v28 }
  0xc4   :  { %v207_v34 = vmul.f32 %v195_v29, %v195_v29  ;;  %v208_v35 = vmul.f32 %v196_v30, %v196_v30  ;;  %v215_v43 = vmul.f32 %v195_v29, %v159_v4  ;;  %v216_v2 = vmul.f32 %v196_v30, %v160_v5 }
  0xc6   :  { %v209_v36 = vadd.f32 %v207_v34, %v205_v32  ;;  %v210_v37 = vadd.f32 %v208_v35, %v206_v33  ;;  %v217_v46 = vadd.f32 %v215_v43, %v213_v44  ;;  %v218_v48 = vadd.f32 %v216_v2, %v214_v45 }
  0xc8   :  { %v211_v40 = vadd.f32 1e-10, %v209_v36  ;;  %v212_v41 = vadd.f32 1e-10, %v210_v37 }
  0xca   :  { %v219_v42 = vmul.f32 %v211_v40, %v203_v38  ;;  %v220_v3 = vmul.f32 %v212_v41, %v204_v39 }
  0xcc   :  { %269 = vrsqrt.f32 %v219_v42 }
  0xcd   :  { %271 = vrsqrt.f32 %v220_v3 }
  0xd9   :  { %v270_v47 = vpop.eup %269 }
  0xda   :  { %v272_v49 = vpop.eup %271  ;;  %v223_v50 = vmul.f32 %v270_v47, %v217_v46 }
  0xdb   :  { %v224_v51 = vmul.f32 %v272_v49, %v218_v48 }
  0xdc   :  { %v225_v52 = vmul.f32 %v223_v50, %v223_v50 }
  0xdd   :  { %v226_v53 = vmul.f32 %v224_v51, %v224_v51 }
  0xdf   :  { %v227_v54 = vadd.f32 %v226_v53, %v225_v52 }
  0xe1   :  { %228 = vadd.xlane.f32.xlu0 %v227_v54 }
 0x16a   :  { %v229_v55 = vpop.xlane.xlu0 %228 }
 0x16b   :  { %v230_v56 = vrot.slane %v229_v55, 4 }
 0x16d   :  { %v231_v57 = vadd.f32 %v230_v56, %v229_v55 }
 0x16f   :  { %v232_v60 = vrot.slane %v231_v57, 2 }
 0x171   :  { %v233_v61 = vadd.f32 %v232_v60, %v231_v57 }
 0x173   :  { %v234_v62 = vrot.slane %v233_v61, 1 }
 0x175   :  { %v235_v63 = vadd.f32 %v234_v62, %v233_v61 }
 0x177   :  { %257 = vpush %v235_v63 }
 0x1a8   :  { %s258_s11 = spop %257 }
 0x1a9   :  { %v237_v58 = vstv %s258_s11 }
 0x1aa   :  { %239 = vst.msk [vmem:[#allocation10] sm:$0x1] %vm238_vm0, %v237_v58 }
 0x1ab   :  { %364 = shalt.err (!%p361_p10)
}
 0x1ac   :  { %249 = dma.vmem_to_hbm [thread:$0]  %s247_s10, 16, %s577_s4, [#allocation4]  }
 0x1ad   :  { %379 = dma.done.wait [#allocation4], 16  }
 0x1ae   :  { %380 = vsyncadd [#allocation4], 4294967280 }
 0x1af   :  { %253 = vsyncpa [#allocation3], 1 }
 0x1b0   :  { %254 = vsyncpa [#allocation6], 1 }
 0x1b1   :  { %255 = vsyncpa [#allocation9], 1 }
 0x1b2   :  { %256 = vsyncpa [#allocation4], 1 }

</bundles_post_ra>
